<compile_context>
chip_gen: v7x
topology: tpu7x:2x2x1
jax: 0.10.0
libtpu: 0.0.40
codegen_flags: <defaults>
</compile_context>

<pallas_src>
import jax
import jax.numpy as jnp
from jax.experimental import pallas as pl
from jax.experimental.pallas import tpu as pltpu


def _round_up(x, m):
    return (x + m - 1) // m * m


def mlp_kernel(x_ref, w1_ref, b1_ref, w2_ref, b2_ref, o_ref):
    # Hidden layer: (TB, 896) @ (896, 512) on the MXU, f32 accumulation.
    h = jnp.dot(x_ref[...], w1_ref[...], preferred_element_type=jnp.float32)
    # Bias + ReLU in f32 on the VPU.
    h = jnp.maximum(h + b1_ref[...], 0.0)
    # Output layer: (TB, 512) @ (512, 128). drop_factor already folded into w2.
    out = jnp.dot(h.astype(w2_ref.dtype), w2_ref[...],
                  preferred_element_type=jnp.float32)
    o_ref[...] = (out + b2_ref[...]).astype(o_ref.dtype)


def network_forward(x, w1, b1, drop_factor, w2, b2, *, block_b=256,
                    compute_dtype=jnp.bfloat16):
    """Eval-mode forward of Network. x: (B, 784) f32 -> logits (B, 10) f32."""
    B, K = x.shape                     # (B, 784)
    H = w1.shape[1]                    # 512
    O = w2.shape[1]                    # 10

    K_pad = _round_up(K, 128)          # 784 -> 896: lane-dense contraction dim
    O_pad = _round_up(O, 128)          # 10  -> 128: lane-dense output stores

    # Fold the eval-mode dropout scale into w2:
    #   (relu(z) * d) @ w2 == relu(z) @ (d[:, None] * w2)
    w2_eff = drop_factor.reshape(H, 1).astype(jnp.float32) * w2.astype(jnp.float32)

    x_p = jnp.pad(x, ((0, 0), (0, K_pad - K))).astype(compute_dtype)
    w1_p = jnp.pad(w1, ((0, K_pad - K), (0, 0))).astype(compute_dtype)
    b1_p = b1.reshape(1, H).astype(jnp.float32)
    w2_p = jnp.pad(w2_eff, ((0, 0), (0, O_pad - O))).astype(compute_dtype)
    b2_p = jnp.pad(b2.reshape(1, O), ((0, 0), (0, O_pad - O))).astype(jnp.float32)

    # Batch tiling: single tile for small B; "parallel" grid for large B so the
    # two v7x TensorCores each take half the batch. Weights use constant
    # index_maps so they remain VMEM-resident across batch tiles.
    TB = min(block_b, _round_up(B, 8))
    B_pad = _round_up(B, TB)
    if B_pad != B:
        x_p = jnp.pad(x_p, ((0, B_pad - B), (0, 0)))
    grid = (B_pad // TB,)

    itemsize = jnp.dtype(compute_dtype).itemsize
    cost = pl.CostEstimate(
        flops=2 * B_pad * (K_pad * H + H * O_pad),
        transcendentals=0,
        bytes_accessed=(x_p.size * itemsize + w1_p.size * itemsize
                        + w2_p.size * itemsize + b1_p.size * 4 + b2_p.size * 4
                        + B_pad * O_pad * 4),
    )

    out = pl.pallas_call(
        mlp_kernel,
        out_shape=jax.ShapeDtypeStruct((B_pad, O_pad), jnp.float32),
        grid_spec=pltpu.PrefetchScalarGridSpec(
            num_scalar_prefetch=0,
            grid=grid,
            in_specs=[
                pl.BlockSpec((TB, K_pad), lambda i: (i, 0)),   # x batch tile
                pl.BlockSpec((K_pad, H), lambda i: (0, 0)),    # w1 (resident)
                pl.BlockSpec((1, H), lambda i: (0, 0)),        # b1 (resident)
                pl.BlockSpec((H, O_pad), lambda i: (0, 0)),    # w2 (resident)
                pl.BlockSpec((1, O_pad), lambda i: (0, 0)),    # b2 (resident)
            ],
            out_specs=pl.BlockSpec((TB, O_pad), lambda i: (i, 0)),
        ),
        compiler_params=pltpu.CompilerParams(
            dimension_semantics=("parallel",)),
        cost_estimate=cost,
    )(x_p, w1_p, b1_p, w2_p, b2_p)

    return out[:B, :O]


def init_params(key):
    """Deterministic param init matching nn.Linear shapes (stored transposed)."""
    k1, k2, k3, k4 = jax.random.split(key, 4)
    # F1: Linear(784, 512)  -> w1 (784, 512), b1 (512,)
    lim1 = 1.0 / jnp.sqrt(784.0)
    w1 = jax.random.uniform(k1, (784, 512), jnp.float32, -lim1, lim1)
    b1 = jax.random.uniform(k2, (512,), jnp.float32, -lim1, lim1)
    # FO: Linear(512, 10)   -> w2 (512, 10), b2 (10,)
    lim2 = 1.0 / jnp.sqrt(512.0)
    w2 = jax.random.uniform(k3, (512, 10), jnp.float32, -lim2, lim2)
    b2 = jax.random.uniform(k4, (10,), jnp.float32, -lim2, lim2)
    # drop_factor = 0.5 * ones(512)
    drop_factor = jnp.full((512,), 0.5, jnp.float32)
    return w1, b1, drop_factor, w2, b2


if __name__ == "__main__":
    key = jax.random.PRNGKey(0)
    kx, kp = jax.random.split(key)

    batch = 8
    x = jax.random.normal(kx, (batch, 784), jnp.float32)
    w1, b1, drop_factor, w2, b2 = init_params(kp)

    out = network_forward(x, w1, b1, drop_factor, w2, b2)
    out = jax.block_until_ready(out)
    assert out.shape == (batch, 10)

    # Reference 1: mirrors the kernel's precision path (bf16 operands, f32 acc).
    xb = x.astype(jnp.bfloat16)
    w1b = w1.astype(jnp.bfloat16)
    w2b = (drop_factor[:, None] * w2).astype(jnp.bfloat16)
    h_ref = jnp.maximum(
        jnp.dot(xb, w1b, preferred_element_type=jnp.float32) + b1, 0.0)
    ref_bf16 = jnp.dot(h_ref.astype(jnp.bfloat16), w2b,
                       preferred_element_type=jnp.float32) + b2
    assert jnp.allclose(out, ref_bf16, atol=1e-3, rtol=1e-3)

    # Reference 2: original eval-mode f32 semantics (looser tolerance for bf16 cast).
    ref_f32 = jnp.maximum(x @ w1 + b1, 0.0) * drop_factor
    ref_f32 = ref_f32 @ w2 + b2
    assert jnp.allclose(out, ref_f32, atol=2e-2, rtol=2e-2)

    print("KERNEL_OK")
</pallas_src>

<mosaic_0001>
module attributes {stable_mosaic.version = 11 : i64} {
  func.func @mlp_kernel(%arg0: i32, %arg1: memref<8x896xbf16, #tpu.memory_space<vmem>>, %arg2: memref<896x512xbf16, #tpu.memory_space<vmem>>, %arg3: memref<1x512xf32, #tpu.memory_space<vmem>>, %arg4: memref<512x128xbf16, #tpu.memory_space<vmem>>, %arg5: memref<1x128xf32, #tpu.memory_space<vmem>>, %arg6: memref<8x128xf32, #tpu.memory_space<vmem>>) attributes {dimension_semantics = [#tpu.dimension_semantics<parallel>], iteration_bounds = array<i64: 1>, scalar_prefetch = 0 : i64, scratch_operands = 0 : i64, tpu.core_type = #tpu.core_type<tc>, window_params = [{transform_indices = @transform_0, window_bounds = array<i64: 8, 896>}, {pipeline_mode = #tpu.pipeline_mode<synchronous>, transform_indices = @transform_1, window_bounds = array<i64: 896, 512>}, {pipeline_mode = #tpu.pipeline_mode<synchronous>, transform_indices = @transform_2, window_bounds = array<i64: 1, 512>}, {pipeline_mode = #tpu.pipeline_mode<synchronous>, transform_indices = @transform_3, window_bounds = array<i64: 512, 128>}, {pipeline_mode = #tpu.pipeline_mode<synchronous>, transform_indices = @transform_4, window_bounds = array<i64: 1, 128>}, {transform_indices = @transform_5, window_bounds = array<i64: 8, 128>}]} {
    %c0 = arith.constant 0 : index
    %c0_0 = arith.constant 0 : index
    %0 = vector.load %arg1[%c0, %c0_0] : memref<8x896xbf16, #tpu.memory_space<vmem>>, vector<8x896xbf16>
    %c0_1 = arith.constant 0 : index
    %c0_2 = arith.constant 0 : index
    %1 = vector.load %arg2[%c0_1, %c0_2] : memref<896x512xbf16, #tpu.memory_space<vmem>>, vector<896x512xbf16>
    %cst = arith.constant dense<0.000000e+00> : vector<8x512xf32>
    %2 = tpu.matmul %0, %1, %cst {dimension_numbers = #tpu.dot_dimension_numbers<[1], [0], [0], [1], [0, 0, 1, 1], [], []>} : vector<8x896xbf16>, vector<896x512xbf16>, vector<8x512xf32> -> vector<8x512xf32>
    %c0_3 = arith.constant 0 : index
    %c0_4 = arith.constant 0 : index
    %3 = vector.load %arg3[%c0_3, %c0_4] : memref<1x512xf32, #tpu.memory_space<vmem>>, vector<1x512xf32>
    %4 = vector.broadcast %3 : vector<1x512xf32> to vector<8x512xf32>
    %5 = arith.addf %2, %4 : vector<8x512xf32>
    %cst_5 = arith.constant 0.000000e+00 : f32
    %6 = vector.broadcast %cst_5 : f32 to vector<8x512xf32>
    %7 = arith.maximumf %5, %6 : vector<8x512xf32>
    %8 = arith.truncf %7 : vector<8x512xf32> to vector<8x512xbf16>
    %c0_6 = arith.constant 0 : index
    %c0_7 = arith.constant 0 : index
    %9 = vector.load %arg4[%c0_6, %c0_7] : memref<512x128xbf16, #tpu.memory_space<vmem>>, vector<512x128xbf16>
    %cst_8 = arith.constant dense<0.000000e+00> : vector<8x128xf32>
    %10 = tpu.matmul %8, %9, %cst_8 {dimension_numbers = #tpu.dot_dimension_numbers<[1], [0], [0], [1], [0, 0, 1, 1], [], []>} : vector<8x512xbf16>, vector<512x128xbf16>, vector<8x128xf32> -> vector<8x128xf32>
    %c0_9 = arith.constant 0 : index
    %c0_10 = arith.constant 0 : index
    %11 = vector.load %arg5[%c0_9, %c0_10] : memref<1x128xf32, #tpu.memory_space<vmem>>, vector<1x128xf32>
    %12 = vector.broadcast %11 : vector<1x128xf32> to vector<8x128xf32>
    %13 = arith.addf %10, %12 : vector<8x128xf32>
    %c0_11 = arith.constant 0 : index
    %c0_12 = arith.constant 0 : index
    %14 = vector.load %arg6[%c0_11, %c0_12] : memref<8x128xf32, #tpu.memory_space<vmem>>, vector<8x128xf32>
    tpu.vector_store %arg6[%c0_11, %c0_12], %13 {strides = array<i32>} : memref<8x128xf32, #tpu.memory_space<vmem>>, vector<8x128xf32>,
    return
  }
  func.func @transform_0(%arg0: i32) -> (i32, i32) {
    %c0_i32 = arith.constant 0 : i32
    %c0_i32_0 = arith.constant 0 : i32
    return %arg0, %c0_i32 : i32, i32
  }
  func.func @transform_1(%arg0: i32) -> (i32, i32) {
    %c0_i32 = arith.constant 0 : i32
    %c0_i32_0 = arith.constant 0 : i32
    %c0_i32_1 = arith.constant 0 : i32
    return %c0_i32, %c0_i32_0 : i32, i32
  }
  func.func @transform_2(%arg0: i32) -> (i32, i32) {
    %c0_i32 = arith.constant 0 : i32
    %c0_i32_0 = arith.constant 0 : i32
    %c0_i32_1 = arith.constant 0 : i32
    return %c0_i32, %c0_i32_0 : i32, i32
  }
  func.func @transform_3(%arg0: i32) -> (i32, i32) {
    %c0_i32 = arith.constant 0 : i32
    %c0_i32_0 = arith.constant 0 : i32
    %c0_i32_1 = arith.constant 0 : i32
    return %c0_i32, %c0_i32_0 : i32, i32
  }
  func.func @transform_4(%arg0: i32) -> (i32, i32) {
    %c0_i32 = arith.constant 0 : i32
    %c0_i32_0 = arith.constant 0 : i32
    %c0_i32_1 = arith.constant 0 : i32
    return %c0_i32, %c0_i32_0 : i32, i32
  }
  func.func @transform_5(%arg0: i32) -> (i32, i32) {
    %c0_i32 = arith.constant 0 : i32
    %c0_i32_0 = arith.constant 0 : i32
    return %arg0, %c0_i32 : i32, i32
  }
}

</mosaic_0001>

<bundles_post_ra>
// kernel: tpu_custom_call.1
= control target key start
LH: loop header
LB: loop body
LE: loop exit
PB: predicated region body
PF: predicated region fallthrough
CT: control target
= control target key end

     0   :  { %10 = vsyncpa [#allocation3], 0  ;;  %s3071_s0 = inlined_call_operand.hbm [shape: bf16[8,896], index: 0, kind: input, shape index: {}]   ;;  %s3072_s1 = inlined_call_operand.hbm [shape: bf16[896,512], index: 1, kind: input, shape index: {}]   ;;  %s3073_s2 = inlined_call_operand.vmem [shape: f32[1,512], index: 2, kind: input, shape index: {}]   ;;  %s3074_s3 = inlined_call_operand.hbm [shape: bf16[512,128], index: 3, kind: input, shape index: {}]   ;;  %s3075_s4 = inlined_call_operand.vmem [shape: f32[1,128], index: 4, kind: input, shape index: {}]   ;;  %s3076_s5 = inlined_call_operand.hbm [shape: f32[8,128], index: 5, kind: output, shape index: {}]  }
   0x1   :  { %11 = vsyncpa [#allocation6], 0 }
   0x2   :  { %12 = vsyncpa [#allocation4], 0  ;;  %s2966_s18 = smov [#allocation5]   ;;  %s2872_s22 = scalar_lea.hbm %s3072_s1, 28672 }
   0x3   :  { %s28_s19 = sshll.u32 %s2966_s18, 4  ;;  %p2873_p0 = scmp.ne.s32.totalorder %s3072_s1, %s2872_s22  ;;  %s29_s19 = int_to_ptr.vmem [resolvable:$true] %s28_s19 }
   0x4   :  { %p2876_p1 = scmp.lt.u32.totalorder %s2872_s22, %s3072_s1 }
   0x6   :  { %p2878_p2 = pnand %p2876_p1, %p2873_p0 }
   0x8   :  { %2881 = shalt.err (!%p2878_p2)
}
   0x9   :  { %s2882_s27 = scalar_lea.vmem %s29_s19, 28672  ;;  %p2887_p4 = scmp.lt.s32.totalorder %s29_s19, %s29_s19 }
   0xa   :  { %p2883_p3 = scmp.ne.s32.totalorder %s29_s19, %s2882_s27  ;;  %p2888_p5 = scmp.lt.s32.totalorder %s2882_s27, %s2882_s27 }
   0xc   :  { %p2889_p6 = por %p2888_p5, %p2887_p4 }
   0xe   :  { %p2890_p7 = pnand %p2889_p6, %p2883_p3 }
  0x10   :  { %2893 = shalt.err (!%p2890_p7)
}
  0x11   :  { %s2967_s28 = smov 256   ;;  %s2968_s29 = smov 16  }
  0x12   :  { %34 = dma.hbm_to_vmem [thread:$0]  %s3072_s1, 28672, %s29_s19, [#allocation6], %s2967_s28, %s2967_s28, %s2968_s29  }
  0x13   :  { %s2969_s7 = smov [#allocation2]   ;;  %s2970_s9 = smov [#allocation7]  }
  0x14   :  { %s19_s8 = sshll.u32 %s2969_s7, 4  ;;  %s42_s10 = sshll.u32 %s2970_s9, 4  ;;  %s20_s8 = int_to_ptr.vmem [resolvable:$true] %s19_s8  ;;  %s43_s10 = int_to_ptr.vmem [resolvable:$true] %s42_s10 }
  0x15   :  { %s2894_s13 = scalar_lea.hbm %s3071_s0, 448 }
  0x16   :  { %p2895_p8 = scmp.ne.s32.totalorder %s3071_s0, %s2894_s13  ;;  %p2898_p9 = scmp.lt.u32.totalorder %s2894_s13, %s3071_s0 }
  0x18   :  { %p2900_p10 = pnand %p2898_p9, %p2895_p8 }
  0x1a   :  { %2903 = shalt.err (!%p2900_p10)
}
  0x1b   :  { %s2904_s1 = scalar_lea.vmem %s20_s8, 448  ;;  %p2909_p12 = scmp.lt.s32.totalorder %s20_s8, %s20_s8 }
  0x1c   :  { %p2905_p11 = scmp.ne.s32.totalorder %s20_s8, %s2904_s1  ;;  %p2910_p13 = scmp.lt.s32.totalorder %s2904_s1, %s2904_s1 }
  0x1e   :  { %p2911_p0 = por %p2910_p13, %p2909_p12 }
  0x20   :  { %p2912_p1 = pnand %p2911_p0, %p2905_p11 }
  0x22   :  { %2915 = shalt.err (!%p2912_p1)
}
  0x23   :  { %22 = dma.hbm_to_vmem [thread:$0]  %s3071_s0, 448, %s20_s8, [#allocation3]  }
  0x24   :  { %s2916_s22 = scalar_lea.hbm %s3074_s3, 4096 }
  0x25   :  { %p2917_p2 = scmp.ne.s32.totalorder %s3074_s3, %s2916_s22  ;;  %p2920_p3 = scmp.lt.u32.totalorder %s2916_s22, %s3074_s3 }
  0x27   :  { %p2922_p4 = pnand %p2920_p3, %p2917_p2 }
  0x29   :  { %2925 = shalt.err (!%p2922_p4)
}
  0x2a   :  { %s2926_s27 = scalar_lea.vmem %s43_s10, 4096  ;;  %p2931_p6 = scmp.lt.s32.totalorder %s43_s10, %s43_s10 }
  0x2b   :  { %p2927_p5 = scmp.ne.s32.totalorder %s43_s10, %s2926_s27  ;;  %p2932_p7 = scmp.lt.s32.totalorder %s2926_s27, %s2926_s27 }
  0x2d   :  { %p2933_p8 = por %p2932_p7, %p2931_p6 }
  0x2f   :  { %p2934_p9 = pnand %p2933_p8, %p2927_p5 }
  0x31   :  { %2937 = shalt.err (!%p2934_p9)
}
  0x32   :  { %s2971_s0 = smov 64   ;;  %s2972_s28 = smov 4  }
  0x33   :  { %48 = dma.hbm_to_vmem [thread:$0]  %s3074_s3, 4096, %s43_s10, [#allocation6], %s2971_s0, %s2971_s0, %s2972_s28  }
  0x34   :  { %2960 = dma.done.wait [#allocation3], 448  }
  0x35   :  { %2961 = vsyncadd [#allocation3], 4294966848 }
  0x36   :  { %2962 = dma.done.wait [#allocation6], 32768  }
  0x37   :  { %2963 = vsyncadd [#allocation6], 4294934528  ;;  %v2497_v0 = vld [vmem:[#allocation5 + $0x4] ss:$16 sps:$4 sm:$0xff]   ;;  %v2499_v1 = vld [vmem:[#allocation5 + $0xc] ss:$16 sps:$4 sm:$0xff]  }
  0x38   :  { %1456 = vmatprep.subr.bf16.mxu0 %v2497_v0  ;;  %v2501_v2 = vld [vmem:[#allocation5] ss:$16 sps:$4 sm:$0xff]   ;;  %v2502_v3 = vld [vmem:[#allocation5 + $0x8] ss:$16 sps:$4 sm:$0xff]   ;;  %1620 = vmatprep.subr.bf16.mxu1 %v2499_v1  ;;  %v2503_v4 = vld [vmem:[#allocation5 + $0x24] ss:$16 sps:$4 sm:$0xff]  }
  0x39   :  { %1457 = vmatpush1.bf16.msra.mxu0 %v2501_v2  ;;  %1621 = vmatpush1.bf16.msra.mxu1 %v2502_v3  ;;  %v2505_v5 = vld [vmem:[#allocation5 + $0x2c] ss:$16 sps:$4 sm:$0xff]   ;;  %v2507_v6 = vld [vmem:[#allocation5 + $0x20] ss:$16 sps:$4 sm:$0xff]   ;;  %v2508_v7 = vld [vmem:[#allocation5 + $0x28] ss:$16 sps:$4 sm:$0xff]  }
  0x3a   :  { %1458 = vmatprep.subr.bf16.mxu0 %v2503_v4  ;;  %1622 = vmatprep.subr.bf16.mxu1 %v2505_v5  ;;  %v2509_v8 = vld [vmem:[#allocation5 + $0x44] ss:$16 sps:$4 sm:$0xff]   ;;  %v2511_v9 = vld [vmem:[#allocation5 + $0x4c] ss:$16 sps:$4 sm:$0xff]   ;;  %v2513_v10 = vld [vmem:[#allocation5 + $0x40] ss:$16 sps:$4 sm:$0xff]  }
  0x3b   :  { %v2514_v11 = vld [vmem:[#allocation5 + $0x48] ss:$16 sps:$4 sm:$0xff]   ;;  %v2515_v12 = vld [vmem:[#allocation5 + $0x64] ss:$16 sps:$4 sm:$0xff]   ;;  %v2517_v13 = vld [vmem:[#allocation5 + $0x6c] ss:$16 sps:$4 sm:$0xff]  }
  0x3c   :  { %v2519_v14 = vld [vmem:[#allocation5 + $0x60] ss:$16 sps:$4 sm:$0xff]   ;;  %v2520_v15 = vld [vmem:[#allocation5 + $0x68] ss:$16 sps:$4 sm:$0xff]   ;;  %v2521_v16 = vld [vmem:[#allocation5 + $0x84] ss:$16 sps:$4 sm:$0xff]  }
  0x3d   :  { %1459 = vmatpush1.bf16.msra.mxu0 %v2507_v6  ;;  %1623 = vmatpush1.bf16.msra.mxu1 %v2508_v7  ;;  %v2523_v17 = vld [vmem:[#allocation5 + $0x8c] ss:$16 sps:$4 sm:$0xff]   ;;  %v2525_v18 = vld [vmem:[#allocation5 + $0x80] ss:$16 sps:$4 sm:$0xff]   ;;  %v2526_v19 = vld [vmem:[#allocation5 + $0x88] ss:$16 sps:$4 sm:$0xff]  }
  0x3e   :  { %1460 = vmatprep.subr.bf16.mxu0 %v2509_v8  ;;  %1624 = vmatprep.subr.bf16.mxu1 %v2511_v9  ;;  %v2527_v20 = vld [vmem:[#allocation5 + $0xa4] ss:$16 sps:$4 sm:$0xff]   ;;  %v2529_v21 = vld [vmem:[#allocation5 + $0xac] ss:$16 sps:$4 sm:$0xff]   ;;  %v2531_v22 = vld [vmem:[#allocation5 + $0xa0] ss:$16 sps:$4 sm:$0xff]  }
  0x3f   :  { %v2532_v23 = vld [vmem:[#allocation5 + $0xa8] ss:$16 sps:$4 sm:$0xff]   ;;  %v2533_v24 = vld [vmem:[#allocation5 + $0xc4] ss:$16 sps:$4 sm:$0xff]   ;;  %v2535_v25 = vld [vmem:[#allocation5 + $0xcc] ss:$16 sps:$4 sm:$0xff]  }
  0x40   :  { %v2537_v26 = vld [vmem:[#allocation5 + $0xc0] ss:$16 sps:$4 sm:$0xff]   ;;  %v2538_v27 = vld [vmem:[#allocation5 + $0xc8] ss:$16 sps:$4 sm:$0xff]   ;;  %v2539_v28 = vld [vmem:[#allocation5 + $0xe4] ss:$16 sps:$4 sm:$0xff]  }
  0x41   :  { %1461 = vmatpush1.bf16.msra.mxu0 %v2513_v10  ;;  %1625 = vmatpush1.bf16.msra.mxu1 %v2514_v11  ;;  %v2541_v29 = vld [vmem:[#allocation5 + $0xec] ss:$16 sps:$4 sm:$0xff]   ;;  %v2543_v30 = vld [vmem:[#allocation5 + $0xe0] ss:$16 sps:$4 sm:$0xff]   ;;  %v2544_v31 = vld [vmem:[#allocation5 + $0xe8] ss:$16 sps:$4 sm:$0xff]  }
  0x42   :  { %1462 = vmatprep.subr.bf16.mxu0 %v2515_v12  ;;  %1626 = vmatprep.subr.bf16.mxu1 %v2517_v13  ;;  %v2545_v32 = vld [vmem:[#allocation5 + $0x104] ss:$16 sps:$4 sm:$0xff]   ;;  %v2547_v33 = vld [vmem:[#allocation5 + $0x10c] ss:$16 sps:$4 sm:$0xff]   ;;  %v2549_v34 = vld [vmem:[#allocation5 + $0x100] ss:$16 sps:$4 sm:$0xff]  }
  0x43   :  { %v2550_v35 = vld [vmem:[#allocation5 + $0x108] ss:$16 sps:$4 sm:$0xff]   ;;  %v2551_v36 = vld [vmem:[#allocation5 + $0x124] ss:$16 sps:$4 sm:$0xff]   ;;  %v2553_v37 = vld [vmem:[#allocation5 + $0x12c] ss:$16 sps:$4 sm:$0xff]  }
  0x44   :  { %v2555_v38 = vld [vmem:[#allocation5 + $0x120] ss:$16 sps:$4 sm:$0xff]   ;;  %v2556_v39 = vld [vmem:[#allocation5 + $0x128] ss:$16 sps:$4 sm:$0xff]   ;;  %v2557_v40 = vld [vmem:[#allocation5 + $0x144] ss:$16 sps:$4 sm:$0xff]  }
  0x45   :  { %1463 = vmatpush1.bf16.msra.mxu0 %v2519_v14  ;;  %1627 = vmatpush1.bf16.msra.mxu1 %v2520_v15  ;;  %v2559_v41 = vld [vmem:[#allocation5 + $0x14c] ss:$16 sps:$4 sm:$0xff]   ;;  %v2561_v42 = vld [vmem:[#allocation5 + $0x140] ss:$16 sps:$4 sm:$0xff]   ;;  %v2562_v43 = vld [vmem:[#allocation5 + $0x148] ss:$16 sps:$4 sm:$0xff]  }
  0x46   :  { %1464 = vmatprep.subr.bf16.mxu0 %v2521_v16  ;;  %1628 = vmatprep.subr.bf16.mxu1 %v2523_v17  ;;  %v2563_v44 = vld [vmem:[#allocation5 + $0x164] ss:$16 sps:$4 sm:$0xff]   ;;  %v2565_v45 = vld [vmem:[#allocation5 + $0x16c] ss:$16 sps:$4 sm:$0xff]   ;;  %v2567_v47 = vld [vmem:[#allocation5 + $0x160] ss:$16 sps:$4 sm:$0xff]  }
  0x47   :  { %v61_v46 = vld [vmem:[#allocation2] sm:$0xff]  ;;  %v2571_v51 = vld [vmem:[#allocation5 + $0x18c] ss:$16 sps:$4 sm:$0xff]   ;;  %v2573_v52 = vld [vmem:[#allocation5 + $0x180] ss:$16 sps:$4 sm:$0xff]   ;;  %s2974_s8 = smov [#allocation8]  }
  0x48   :  { %v2153_v48 = vcombine.high %v61_v46, %v61_v46  ;;  %v2568_v49 = vld [vmem:[#allocation5 + $0x168] ss:$16 sps:$4 sm:$0xff]   ;;  %v2569_v50 = vld [vmem:[#allocation5 + $0x184] ss:$16 sps:$4 sm:$0xff]   ;;  %v2577_v55 = vld [vmem:[#allocation5 + $0x1ac] ss:$16 sps:$4 sm:$0xff]   ;;  %v2152_v4 = vcombine.low %v61_v46, %v61_v46 }
  0x49   :  { %1465 = vmatpush1.bf16.msra.mxu0 %v2525_v18  ;;  %1629 = vmatpush1.bf16.msra.mxu1 %v2526_v19  ;;  %v2574_v53 = vld [vmem:[#allocation5 + $0x188] ss:$16 sps:$4 sm:$0xff]   ;;  %v2575_v54 = vld [vmem:[#allocation5 + $0x1a4] ss:$16 sps:$4 sm:$0xff]   ;;  %v2579_v56 = vld [vmem:[#allocation5 + $0x1a0] ss:$16 sps:$4 sm:$0xff]  }
  0x4a   :  { %1466 = vmatprep.subr.bf16.mxu0 %v2527_v20  ;;  %1630 = vmatprep.subr.bf16.mxu1 %v2529_v21  ;;  %v2580_v57 = vld [vmem:[#allocation5 + $0x1a8] ss:$16 sps:$4 sm:$0xff]   ;;  %v2581_v58 = vld [vmem:[#allocation5 + $0x1c4] ss:$16 sps:$4 sm:$0xff]   ;;  %v2583_v59 = vld [vmem:[#allocation5 + $0x1cc] ss:$16 sps:$4 sm:$0xff]  }
  0x4b   :  { %1488 = vmatprep.mubr.bf16.mxu0 %v2153_v48  ;;  %1652 = vmatprep.mubr.bf16.mxu1 %v2153_v48  ;;  %v2585_v60 = vld [vmem:[#allocation5 + $0x1c0] ss:$16 sps:$4 sm:$0xff]   ;;  %v2586_v61 = vld [vmem:[#allocation5 + $0x1c8] ss:$16 sps:$4 sm:$0xff]   ;;  %v2587_v62 = vld [vmem:[#allocation5 + $0x1e4] ss:$16 sps:$4 sm:$0xff]  }
  0x4c   :  { %v2589_v63 = vld [vmem:[#allocation5 + $0x1ec] ss:$16 sps:$4 sm:$0xff]   ;;  %v2591_v0 = vld [vmem:[#allocation5 + $0x1e0] ss:$16 sps:$4 sm:$0xff]   ;;  %v2592_v1 = vld [vmem:[#allocation5 + $0x1e8] ss:$16 sps:$4 sm:$0xff]  }
  0x4d   :  { %1467 = vmatpush1.bf16.msra.mxu0 %v2531_v22  ;;  %1631 = vmatpush1.bf16.msra.mxu1 %v2532_v23  ;;  %v2597_v2 = vld [vmem:[#allocation5 + $0x204] ss:$16 sps:$4 sm:$0xff]   ;;  %v2600_v3 = vld [vmem:[#allocation5 + $0x20c] ss:$16 sps:$4 sm:$0xff]   ;;  %v2595_v5 = vld [vmem:[#allocation5 + $0x200] ss:$16 sps:$4 sm:$0xff]  }
  0x4e   :  { %1468 = vmatprep.subr.bf16.mxu0 %v2533_v24  ;;  %1632 = vmatprep.subr.bf16.mxu1 %v2535_v25  ;;  %v2598_v6 = vld [vmem:[#allocation5 + $0x208] ss:$16 sps:$4 sm:$0xff]   ;;  %v2603_v7 = vld [vmem:[#allocation5 + $0x224] ss:$16 sps:$4 sm:$0xff]   ;;  %v2606_v8 = vld [vmem:[#allocation5 + $0x22c] ss:$16 sps:$4 sm:$0xff]  }
  0x4f   :  { %v2601_v9 = vld [vmem:[#allocation5 + $0x220] ss:$16 sps:$4 sm:$0xff]   ;;  %v2604_v10 = vld [vmem:[#allocation5 + $0x228] ss:$16 sps:$4 sm:$0xff]   ;;  %v2609_v11 = vld [vmem:[#allocation5 + $0x244] ss:$16 sps:$4 sm:$0xff]  }
  0x50   :  { %v2612_v12 = vld [vmem:[#allocation5 + $0x24c] ss:$16 sps:$4 sm:$0xff]   ;;  %v2607_v13 = vld [vmem:[#allocation5 + $0x240] ss:$16 sps:$4 sm:$0xff]   ;;  %v2610_v14 = vld [vmem:[#allocation5 + $0x248] ss:$16 sps:$4 sm:$0xff]  }
  0x51   :  { %1469 = vmatpush1.bf16.msra.mxu0 %v2537_v26  ;;  %1633 = vmatpush1.bf16.msra.mxu1 %v2538_v27  ;;  %v2615_v15 = vld [vmem:[#allocation5 + $0x264] ss:$16 sps:$4 sm:$0xff]   ;;  %v2618_v16 = vld [vmem:[#allocation5 + $0x26c] ss:$16 sps:$4 sm:$0xff]   ;;  %v2613_v17 = vld [vmem:[#allocation5 + $0x260] ss:$16 sps:$4 sm:$0xff]  }
  0x52   :  { %1470 = vmatprep.subr.bf16.mxu0 %v2539_v28  ;;  %1634 = vmatprep.subr.bf16.mxu1 %v2541_v29  ;;  %v2616_v18 = vld [vmem:[#allocation5 + $0x268] ss:$16 sps:$4 sm:$0xff]   ;;  %v2621_v19 = vld [vmem:[#allocation5 + $0x284] ss:$16 sps:$4 sm:$0xff]   ;;  %v2624_v20 = vld [vmem:[#allocation5 + $0x28c] ss:$16 sps:$4 sm:$0xff]  }
  0x53   :  { %v2619_v21 = vld [vmem:[#allocation5 + $0x280] ss:$16 sps:$4 sm:$0xff]   ;;  %v2622_v22 = vld [vmem:[#allocation5 + $0x288] ss:$16 sps:$4 sm:$0xff]   ;;  %v2627_v23 = vld [vmem:[#allocation5 + $0x2a4] ss:$16 sps:$4 sm:$0xff]  }
  0x54   :  { %v2630_v24 = vld [vmem:[#allocation5 + $0x2ac] ss:$16 sps:$4 sm:$0xff]   ;;  %v2625_v25 = vld [vmem:[#allocation5 + $0x2a0] ss:$16 sps:$4 sm:$0xff]   ;;  %v2628_v26 = vld [vmem:[#allocation5 + $0x2a8] ss:$16 sps:$4 sm:$0xff]  }
  0x55   :  { %1471 = vmatpush1.bf16.msra.mxu0 %v2543_v30  ;;  %1635 = vmatpush1.bf16.msra.mxu1 %v2544_v31  ;;  %v2633_v27 = vld [vmem:[#allocation5 + $0x2c4] ss:$16 sps:$4 sm:$0xff]   ;;  %v2636_v28 = vld [vmem:[#allocation5 + $0x2cc] ss:$16 sps:$4 sm:$0xff]   ;;  %v2631_v31 = vld [vmem:[#allocation5 + $0x2c0] ss:$16 sps:$4 sm:$0xff]  }
  0x56   :  { %1472 = vmatprep.subr.bf16.mxu0 %v2545_v32  ;;  %1636 = vmatprep.subr.bf16.mxu1 %v2547_v33  ;;  %v3041_v29 = vld [vmem:[#allocation2 + $0x8] sm:$0xff]  ;;  %v2634_v32 = vld [vmem:[#allocation5 + $0x2c8] ss:$16 sps:$4 sm:$0xff]   ;;  %v2639_v33 = vld [vmem:[#allocation5 + $0x2e4] ss:$16 sps:$4 sm:$0xff]   ;;  %s2142_s9 = sshll.u32 %s2974_s8, 4  ;;  %s2143_s9 = int_to_ptr.vmem [resolvable:$true] %s2142_s9 }
  0x57   :  { %v2155_v30 = vcombine.high %v3041_v29, %v3041_v29  ;;  %v2660_v46 = vld [vmem:[#allocation5 + $0x34c] ss:$16 sps:$4 sm:$0xff]   ;;  %v2658_v48 = vld [vmem:[#allocation5 + $0x348] ss:$16 sps:$4 sm:$0xff]   ;;  %s2938_s10 = scalar_lea.vmem %s2143_s9, 128  ;;  %p2943_p11 = scmp.lt.s32.totalorder %s2143_s9, %s2143_s9 }
  0x58   :  { %p2939_p10 = scmp.ne.s32.totalorder %s2143_s9, %s2938_s10  ;;  %p2944_p12 = scmp.lt.s32.totalorder %s2938_s10, %s2938_s10 }
  0x59   :  { %1473 = vmatpush1.bf16.msra.mxu0 %v2549_v34  ;;  %1637 = vmatpush1.bf16.msra.mxu1 %v2550_v35  ;;  %v2642_v34 = vld [vmem:[#allocation5 + $0x2ec] ss:$16 sps:$4 sm:$0xff]   ;;  %v2637_v35 = vld [vmem:[#allocation5 + $0x2e0] ss:$16 sps:$4 sm:$0xff]  }
  0x5a   :  { %1474 = vmatprep.subr.bf16.mxu0 %v2551_v36  ;;  %1638 = vmatprep.subr.bf16.mxu1 %v2553_v37  ;;  %v2640_v36 = vld [vmem:[#allocation5 + $0x2e8] ss:$16 sps:$4 sm:$0xff]   ;;  %v2645_v37 = vld [vmem:[#allocation5 + $0x304] ss:$16 sps:$4 sm:$0xff]   ;;  %p2945_p13 = por %p2944_p12, %p2943_p11 }
  0x5c   :  { %p2946_p0 = pnand %p2945_p13, %p2939_p10 }
  0x5d   :  { %1475 = vmatpush1.bf16.msra.mxu0 %v2555_v38  ;;  %1639 = vmatpush1.bf16.msra.mxu1 %v2556_v39  ;;  %v2648_v38 = vld [vmem:[#allocation5 + $0x30c] ss:$16 sps:$4 sm:$0xff]   ;;  %v2643_v39 = vld [vmem:[#allocation5 + $0x300] ss:$16 sps:$4 sm:$0xff]  }
  0x5e   :  { %1476 = vmatprep.subr.bf16.mxu0 %v2557_v40  ;;  %1640 = vmatprep.subr.bf16.mxu1 %v2559_v41  ;;  %v2646_v40 = vld [vmem:[#allocation5 + $0x308] ss:$16 sps:$4 sm:$0xff]   ;;  %v2651_v41 = vld [vmem:[#allocation5 + $0x324] ss:$16 sps:$4 sm:$0xff]  }
  0x61   :  { %1477 = vmatpush1.bf16.msra.mxu0 %v2561_v42  ;;  %1641 = vmatpush1.bf16.msra.mxu1 %v2562_v43  ;;  %v2654_v42 = vld [vmem:[#allocation5 + $0x32c] ss:$16 sps:$4 sm:$0xff]   ;;  %v2649_v43 = vld [vmem:[#allocation5 + $0x320] ss:$16 sps:$4 sm:$0xff]  }
  0x62   :  { %1478 = vmatprep.subr.bf16.mxu0 %v2563_v44  ;;  %1642 = vmatprep.subr.bf16.mxu1 %v2565_v45  ;;  %v2652_v44 = vld [vmem:[#allocation5 + $0x328] ss:$16 sps:$4 sm:$0xff]   ;;  %v2657_v45 = vld [vmem:[#allocation5 + $0x344] ss:$16 sps:$4 sm:$0xff]  }
  0x65   :  { %1479 = vmatpush1.bf16.msra.mxu0 %v2567_v47  ;;  %1643 = vmatpush1.bf16.msra.mxu1 %v2568_v49  ;;  %v2655_v47 = vld [vmem:[#allocation5 + $0x340] ss:$16 sps:$4 sm:$0xff]   ;;  %v2663_v49 = vld [vmem:[#allocation5 + $0x364] ss:$16 sps:$4 sm:$0xff]  }
  0x66   :  { %1480 = vmatprep.subr.bf16.mxu0 %v2569_v50  ;;  %1644 = vmatprep.subr.bf16.mxu1 %v2571_v51  ;;  %v2666_v50 = vld [vmem:[#allocation5 + $0x36c] ss:$16 sps:$4 sm:$0xff]   ;;  %v2661_v51 = vld [vmem:[#allocation5 + $0x360] ss:$16 sps:$4 sm:$0xff]  }
  0x69   :  { %1481 = vmatpush1.bf16.msra.mxu0 %v2573_v52  ;;  %1645 = vmatpush1.bf16.msra.mxu1 %v2574_v53  ;;  %v2664_v52 = vld [vmem:[#allocation5 + $0x368] ss:$16 sps:$4 sm:$0xff]   ;;  %v2669_v53 = vld [vmem:[#allocation5 + $0x384] ss:$16 sps:$4 sm:$0xff]  }
  0x6a   :  { %1482 = vmatprep.subr.bf16.mxu0 %v2575_v54  ;;  %1646 = vmatprep.subr.bf16.mxu1 %v2577_v55  ;;  %v2672_v54 = vld [vmem:[#allocation5 + $0x38c] ss:$16 sps:$4 sm:$0xff]   ;;  %v2667_v55 = vld [vmem:[#allocation5 + $0x380] ss:$16 sps:$4 sm:$0xff]  }
  0x6d   :  { %1483 = vmatpush1.bf16.msra.mxu0 %v2579_v56  ;;  %1647 = vmatpush1.bf16.msra.mxu1 %v2580_v57  ;;  %v2670_v56 = vld [vmem:[#allocation5 + $0x388] ss:$16 sps:$4 sm:$0xff]   ;;  %v2675_v57 = vld [vmem:[#allocation5 + $0x3a4] ss:$16 sps:$4 sm:$0xff]  }
  0x6e   :  { %1484 = vmatprep.subr.bf16.mxu0 %v2581_v58  ;;  %1648 = vmatprep.subr.bf16.mxu1 %v2583_v59  ;;  %v2678_v58 = vld [vmem:[#allocation5 + $0x3ac] ss:$16 sps:$4 sm:$0xff]   ;;  %v2673_v59 = vld [vmem:[#allocation5 + $0x3a0] ss:$16 sps:$4 sm:$0xff]  }
  0x71   :  { %1485 = vmatpush1.bf16.msra.mxu0 %v2585_v60  ;;  %1649 = vmatpush1.bf16.msra.mxu1 %v2586_v61  ;;  %v2676_v60 = vld [vmem:[#allocation5 + $0x3a8] ss:$16 sps:$4 sm:$0xff]   ;;  %v2681_v61 = vld [vmem:[#allocation5 + $0x3c4] ss:$16 sps:$4 sm:$0xff]  }
  0x72   :  { %1486 = vmatprep.subr.bf16.mxu0 %v2587_v62  ;;  %1650 = vmatprep.subr.bf16.mxu1 %v2589_v63  ;;  %v2684_v62 = vld [vmem:[#allocation5 + $0x3cc] ss:$16 sps:$4 sm:$0xff]   ;;  %v2679_v63 = vld [vmem:[#allocation5 + $0x3c0] ss:$16 sps:$4 sm:$0xff]  }
  0x75   :  { %1487 = vmatpush1.bf16.msra.mxu0 %v2591_v0  ;;  %1651 = vmatpush1.bf16.msra.mxu1 %v2592_v1  ;;  %v2682_v0 = vld [vmem:[#allocation5 + $0x3c8] ss:$16 sps:$4 sm:$0xff]   ;;  %v2687_v1 = vld [vmem:[#allocation5 + $0x3e4] ss:$16 sps:$4 sm:$0xff]  }
  0x76   :  { %1497 = vmatprep.subr.bf16.mxu0 %v2597_v2  ;;  %1661 = vmatprep.subr.bf16.mxu1 %v2600_v3  ;;  %v2690_v2 = vld [vmem:[#allocation5 + $0x3ec] ss:$16 sps:$4 sm:$0xff]   ;;  %v2685_v3 = vld [vmem:[#allocation5 + $0x3e0] ss:$16 sps:$4 sm:$0xff]  }
  0x78   :  { %1489 = vmatmul.mubr.bf16.vlgmr.msra.gmra.mrb[0].mxu0 %v2152_v4  ;;  %1653 = vmatmul.mubr.bf16.vlgmr.msra.gmra.mrb[0].mxu1 %v2152_v4  ;;  %v2688_v4 = vld [vmem:[#allocation5 + $0x3e8] ss:$16 sps:$4 sm:$0xff]  }
  0x79   :  { %1498 = vmatpush1.bf16.msra.mxu0 %v2595_v5  ;;  %1662 = vmatpush1.bf16.msra.mxu1 %v2598_v6  ;;  %v2695_v5 = vld [vmem:[#allocation5 + $0x404] ss:$16 sps:$4 sm:$0xff]   ;;  %v2698_v6 = vld [vmem:[#allocation5 + $0x40c] ss:$16 sps:$4 sm:$0xff]  }
  0x7a   :  { %1499 = vmatprep.subr.bf16.mxu0 %v2603_v7  ;;  %1663 = vmatprep.subr.bf16.mxu1 %v2606_v8  ;;  %v2154_v7 = vcombine.low %v3041_v29, %v3041_v29  ;;  %v2693_v8 = vld [vmem:[#allocation5 + $0x400] ss:$16 sps:$4 sm:$0xff]   ;;  %v2728_v29 = vld [vmem:[#allocation5 + $0x4ac] ss:$16 sps:$4 sm:$0xff]  }
  0x7b   :  { %1529 = vmatprep.mubr.bf16.mxu0 %v2155_v30  ;;  %1693 = vmatprep.mubr.bf16.mxu1 %v2155_v30  ;;  %v2723_v30 = vld [vmem:[#allocation5 + $0x4a0] ss:$16 sps:$4 sm:$0xff]  }
  0x7d   :  { %1500 = vmatpush1.bf16.msra.mxu0 %v2601_v9  ;;  %1664 = vmatpush1.bf16.msra.mxu1 %v2604_v10  ;;  %v2696_v9 = vld [vmem:[#allocation5 + $0x408] ss:$16 sps:$4 sm:$0xff]   ;;  %v2701_v10 = vld [vmem:[#allocation5 + $0x424] ss:$16 sps:$4 sm:$0xff]  }
  0x7e   :  { %1501 = vmatprep.subr.bf16.mxu0 %v2609_v11  ;;  %1665 = vmatprep.subr.bf16.mxu1 %v2612_v12  ;;  %v3047_v11 = vld [vmem:[#allocation2 + $0x10] sm:$0xff]  ;;  %v2704_v12 = vld [vmem:[#allocation5 + $0x42c] ss:$16 sps:$4 sm:$0xff]  }
  0x81   :  { %1502 = vmatpush1.bf16.msra.mxu0 %v2607_v13  ;;  %1666 = vmatpush1.bf16.msra.mxu1 %v2610_v14  ;;  %v2157_v13 = vcombine.high %v3047_v11, %v3047_v11  ;;  %v2699_v14 = vld [vmem:[#allocation5 + $0x420] ss:$16 sps:$4 sm:$0xff]  }
  0x82   :  { %1503 = vmatprep.subr.bf16.mxu0 %v2615_v15  ;;  %1667 = vmatprep.subr.bf16.mxu1 %v2618_v16  ;;  %v2702_v15 = vld [vmem:[#allocation5 + $0x428] ss:$16 sps:$4 sm:$0xff]   ;;  %v2707_v16 = vld [vmem:[#allocation5 + $0x444] ss:$16 sps:$4 sm:$0xff]  }
  0x85   :  { %1504 = vmatpush1.bf16.msra.mxu0 %v2613_v17  ;;  %1668 = vmatpush1.bf16.msra.mxu1 %v2616_v18  ;;  %v2710_v17 = vld [vmem:[#allocation5 + $0x44c] ss:$16 sps:$4 sm:$0xff]   ;;  %v2705_v18 = vld [vmem:[#allocation5 + $0x440] ss:$16 sps:$4 sm:$0xff]  }
  0x86   :  { %1505 = vmatprep.subr.bf16.mxu0 %v2621_v19  ;;  %1669 = vmatprep.subr.bf16.mxu1 %v2624_v20  ;;  %v2708_v19 = vld [vmem:[#allocation5 + $0x448] ss:$16 sps:$4 sm:$0xff]   ;;  %v2713_v20 = vld [vmem:[#allocation5 + $0x464] ss:$16 sps:$4 sm:$0xff]  }
  0x89   :  { %1506 = vmatpush1.bf16.msra.mxu0 %v2619_v21  ;;  %1670 = vmatpush1.bf16.msra.mxu1 %v2622_v22  ;;  %v2716_v21 = vld [vmem:[#allocation5 + $0x46c] ss:$16 sps:$4 sm:$0xff]   ;;  %v2711_v22 = vld [vmem:[#allocation5 + $0x460] ss:$16 sps:$4 sm:$0xff]  }
  0x8a   :  { %1507 = vmatprep.subr.bf16.mxu0 %v2627_v23  ;;  %1671 = vmatprep.subr.bf16.mxu1 %v2630_v24  ;;  %v2714_v23 = vld [vmem:[#allocation5 + $0x468] ss:$16 sps:$4 sm:$0xff]   ;;  %v2719_v24 = vld [vmem:[#allocation5 + $0x484] ss:$16 sps:$4 sm:$0xff]  }
  0x8d   :  { %1508 = vmatpush1.bf16.msra.mxu0 %v2625_v25  ;;  %1672 = vmatpush1.bf16.msra.mxu1 %v2628_v26  ;;  %v2722_v25 = vld [vmem:[#allocation5 + $0x48c] ss:$16 sps:$4 sm:$0xff]   ;;  %v2717_v26 = vld [vmem:[#allocation5 + $0x480] ss:$16 sps:$4 sm:$0xff]  }
  0x8e   :  { %1509 = vmatprep.subr.bf16.mxu0 %v2633_v27  ;;  %1673 = vmatprep.subr.bf16.mxu1 %v2636_v28  ;;  %v2720_v27 = vld [vmem:[#allocation5 + $0x488] ss:$16 sps:$4 sm:$0xff]   ;;  %v2725_v28 = vld [vmem:[#allocation5 + $0x4a4] ss:$16 sps:$4 sm:$0xff]  }
  0x91   :  { %1510 = vmatpush1.bf16.msra.mxu0 %v2631_v31  ;;  %1674 = vmatpush1.bf16.msra.mxu1 %v2634_v32  ;;  %v2726_v31 = vld [vmem:[#allocation5 + $0x4a8] ss:$16 sps:$4 sm:$0xff]   ;;  %v2731_v32 = vld [vmem:[#allocation5 + $0x4c4] ss:$16 sps:$4 sm:$0xff]  }
  0x92   :  { %1511 = vmatprep.subr.bf16.mxu0 %v2639_v33  ;;  %1675 = vmatprep.subr.bf16.mxu1 %v2642_v34  ;;  %v2734_v33 = vld [vmem:[#allocation5 + $0x4cc] ss:$16 sps:$4 sm:$0xff]   ;;  %v2729_v34 = vld [vmem:[#allocation5 + $0x4c0] ss:$16 sps:$4 sm:$0xff]  }
  0x95   :  { %1512 = vmatpush1.bf16.msra.mxu0 %v2637_v35  ;;  %1676 = vmatpush1.bf16.msra.mxu1 %v2640_v36  ;;  %v2732_v35 = vld [vmem:[#allocation5 + $0x4c8] ss:$16 sps:$4 sm:$0xff]   ;;  %v2737_v36 = vld [vmem:[#allocation5 + $0x4e4] ss:$16 sps:$4 sm:$0xff]  }
  0x96   :  { %1513 = vmatprep.subr.bf16.mxu0 %v2645_v37  ;;  %1677 = vmatprep.subr.bf16.mxu1 %v2648_v38  ;;  %v2740_v37 = vld [vmem:[#allocation5 + $0x4ec] ss:$16 sps:$4 sm:$0xff]   ;;  %v2735_v38 = vld [vmem:[#allocation5 + $0x4e0] ss:$16 sps:$4 sm:$0xff]  }
  0x99   :  { %1514 = vmatpush1.bf16.msra.mxu0 %v2643_v39  ;;  %1678 = vmatpush1.bf16.msra.mxu1 %v2646_v40  ;;  %v2738_v39 = vld [vmem:[#allocation5 + $0x4e8] ss:$16 sps:$4 sm:$0xff]   ;;  %v2743_v40 = vld [vmem:[#allocation5 + $0x504] ss:$16 sps:$4 sm:$0xff]  }
  0x9a   :  { %1515 = vmatprep.subr.bf16.mxu0 %v2651_v41  ;;  %1679 = vmatprep.subr.bf16.mxu1 %v2654_v42  ;;  %v2746_v41 = vld [vmem:[#allocation5 + $0x50c] ss:$16 sps:$4 sm:$0xff]   ;;  %v2741_v42 = vld [vmem:[#allocation5 + $0x500] ss:$16 sps:$4 sm:$0xff]  }
  0x9d   :  { %1516 = vmatpush1.bf16.msra.mxu0 %v2649_v43  ;;  %1680 = vmatpush1.bf16.msra.mxu1 %v2652_v44  ;;  %v2744_v43 = vld [vmem:[#allocation5 + $0x508] ss:$16 sps:$4 sm:$0xff]   ;;  %v2749_v44 = vld [vmem:[#allocation5 + $0x524] ss:$16 sps:$4 sm:$0xff]  }
  0x9e   :  { %1517 = vmatprep.subr.bf16.mxu0 %v2657_v45  ;;  %1681 = vmatprep.subr.bf16.mxu1 %v2660_v46  ;;  %v2752_v45 = vld [vmem:[#allocation5 + $0x52c] ss:$16 sps:$4 sm:$0xff]   ;;  %v2747_v46 = vld [vmem:[#allocation5 + $0x520] ss:$16 sps:$4 sm:$0xff]  }
  0xa1   :  { %1518 = vmatpush1.bf16.msra.mxu0 %v2655_v47  ;;  %1682 = vmatpush1.bf16.msra.mxu1 %v2658_v48  ;;  %v2750_v47 = vld [vmem:[#allocation5 + $0x528] ss:$16 sps:$4 sm:$0xff]   ;;  %v2755_v48 = vld [vmem:[#allocation5 + $0x544] ss:$16 sps:$4 sm:$0xff]  }
  0xa2   :  { %1519 = vmatprep.subr.bf16.mxu0 %v2663_v49  ;;  %1683 = vmatprep.subr.bf16.mxu1 %v2666_v50  ;;  %v2758_v49 = vld [vmem:[#allocation5 + $0x54c] ss:$16 sps:$4 sm:$0xff]   ;;  %v2753_v50 = vld [vmem:[#allocation5 + $0x540] ss:$16 sps:$4 sm:$0xff]  }
  0xa5   :  { %1520 = vmatpush1.bf16.msra.mxu0 %v2661_v51  ;;  %1684 = vmatpush1.bf16.msra.mxu1 %v2664_v52  ;;  %v2756_v51 = vld [vmem:[#allocation5 + $0x548] ss:$16 sps:$4 sm:$0xff]   ;;  %v2761_v52 = vld [vmem:[#allocation5 + $0x564] ss:$16 sps:$4 sm:$0xff]  }
  0xa6   :  { %1521 = vmatprep.subr.bf16.mxu0 %v2669_v53  ;;  %1685 = vmatprep.subr.bf16.mxu1 %v2672_v54  ;;  %v2764_v53 = vld [vmem:[#allocation5 + $0x56c] ss:$16 sps:$4 sm:$0xff]   ;;  %v2759_v54 = vld [vmem:[#allocation5 + $0x560] ss:$16 sps:$4 sm:$0xff]  }
  0xa9   :  { %1522 = vmatpush1.bf16.msra.mxu0 %v2667_v55  ;;  %1686 = vmatpush1.bf16.msra.mxu1 %v2670_v56  ;;  %v2762_v55 = vld [vmem:[#allocation5 + $0x568] ss:$16 sps:$4 sm:$0xff]   ;;  %v2767_v56 = vld [vmem:[#allocation5 + $0x584] ss:$16 sps:$4 sm:$0xff]  }
  0xaa   :  { %1523 = vmatprep.subr.bf16.mxu0 %v2675_v57  ;;  %1687 = vmatprep.subr.bf16.mxu1 %v2678_v58  ;;  %v2770_v57 = vld [vmem:[#allocation5 + $0x58c] ss:$16 sps:$4 sm:$0xff]   ;;  %v2765_v58 = vld [vmem:[#allocation5 + $0x580] ss:$16 sps:$4 sm:$0xff]  }
  0xad   :  { %1524 = vmatpush1.bf16.msra.mxu0 %v2673_v59  ;;  %1688 = vmatpush1.bf16.msra.mxu1 %v2676_v60  ;;  %v2768_v59 = vld [vmem:[#allocation5 + $0x588] ss:$16 sps:$4 sm:$0xff]   ;;  %v2773_v60 = vld [vmem:[#allocation5 + $0x5a4] ss:$16 sps:$4 sm:$0xff]  }
  0xae   :  { %1525 = vmatprep.subr.bf16.mxu0 %v2681_v61  ;;  %1689 = vmatprep.subr.bf16.mxu1 %v2684_v62  ;;  %v2776_v61 = vld [vmem:[#allocation5 + $0x5ac] ss:$16 sps:$4 sm:$0xff]   ;;  %v2771_v62 = vld [vmem:[#allocation5 + $0x5a0] ss:$16 sps:$4 sm:$0xff]  }
  0xb1   :  { %1526 = vmatpush1.bf16.msra.mxu0 %v2679_v63  ;;  %1690 = vmatpush1.bf16.msra.mxu1 %v2682_v0  ;;  %v2774_v63 = vld [vmem:[#allocation5 + $0x5a8] ss:$16 sps:$4 sm:$0xff]   ;;  %v2779_v0 = vld [vmem:[#allocation5 + $0x5c4] ss:$16 sps:$4 sm:$0xff]  }
  0xb2   :  { %1527 = vmatprep.subr.bf16.mxu0 %v2687_v1  ;;  %1691 = vmatprep.subr.bf16.mxu1 %v2690_v2  ;;  %v2782_v1 = vld [vmem:[#allocation5 + $0x5cc] ss:$16 sps:$4 sm:$0xff]   ;;  %v2777_v2 = vld [vmem:[#allocation5 + $0x5c0] ss:$16 sps:$4 sm:$0xff]  }
  0xb5   :  { %1528 = vmatpush1.bf16.msra.mxu0 %v2685_v3  ;;  %1692 = vmatpush1.bf16.msra.mxu1 %v2688_v4  ;;  %v2780_v3 = vld [vmem:[#allocation5 + $0x5c8] ss:$16 sps:$4 sm:$0xff]   ;;  %v2785_v4 = vld [vmem:[#allocation5 + $0x5e4] ss:$16 sps:$4 sm:$0xff]  }
  0xb6   :  { %1538 = vmatprep.subr.bf16.mxu0 %v2695_v5  ;;  %1702 = vmatprep.subr.bf16.mxu1 %v2698_v6  ;;  %v2788_v5 = vld [vmem:[#allocation5 + $0x5ec] ss:$16 sps:$4 sm:$0xff]   ;;  %v2783_v6 = vld [vmem:[#allocation5 + $0x5e0] ss:$16 sps:$4 sm:$0xff]  }
  0xb8   :  { %1530 = vmatmul.mubr.bf16.vlgmr.msra.gmra.mrb[0].mxu0 %v2154_v7  ;;  %1694 = vmatmul.mubr.bf16.vlgmr.msra.gmra.mrb[0].mxu1 %v2154_v7  ;;  %v2786_v7 = vld [vmem:[#allocation5 + $0x5e8] ss:$16 sps:$4 sm:$0xff]  }
  0xb9   :  { %1539 = vmatpush1.bf16.msra.mxu0 %v2693_v8  ;;  %1703 = vmatpush1.bf16.msra.mxu1 %v2696_v9  ;;  %v2793_v8 = vld [vmem:[#allocation5 + $0x604] ss:$16 sps:$4 sm:$0xff]   ;;  %v2796_v9 = vld [vmem:[#allocation5 + $0x60c] ss:$16 sps:$4 sm:$0xff]  }
  0xba   :  { %1540 = vmatprep.subr.bf16.mxu0 %v2701_v10  ;;  %1704 = vmatprep.subr.bf16.mxu1 %v2704_v12  ;;  %v2156_v10 = vcombine.low %v3047_v11, %v3047_v11  ;;  %v2791_v12 = vld [vmem:[#allocation5 + $0x600] ss:$16 sps:$4 sm:$0xff]  }
  0xbb   :  { %1570 = vmatprep.mubr.bf16.mxu0 %v2157_v13  ;;  %1734 = vmatprep.mubr.bf16.mxu1 %v2157_v13  ;;  %v2794_v13 = vld [vmem:[#allocation5 + $0x608] ss:$16 sps:$4 sm:$0xff]   ;;  %v2803_v11 = vld [vmem:[#allocation5 + $0x640] ss:$16 sps:$4 sm:$0xff]  }
  0xbd   :  { %1541 = vmatpush1.bf16.msra.mxu0 %v2699_v14  ;;  %1705 = vmatpush1.bf16.msra.mxu1 %v2702_v15  ;;  %v2799_v14 = vld [vmem:[#allocation5 + $0x624] ss:$16 sps:$4 sm:$0xff]   ;;  %v2802_v15 = vld [vmem:[#allocation5 + $0x62c] ss:$16 sps:$4 sm:$0xff]  }
  0xbe   :  { %1542 = vmatprep.subr.bf16.mxu0 %v2707_v16  ;;  %1706 = vmatprep.subr.bf16.mxu1 %v2710_v17  ;;  %v2797_v16 = vld [vmem:[#allocation5 + $0x620] ss:$16 sps:$4 sm:$0xff]   ;;  %v2800_v17 = vld [vmem:[#allocation5 + $0x628] ss:$16 sps:$4 sm:$0xff]  }
  0xc1   :  { %1543 = vmatpush1.bf16.msra.mxu0 %v2705_v18  ;;  %1707 = vmatpush1.bf16.msra.mxu1 %v2708_v19  ;;  %v2805_v18 = vld [vmem:[#allocation5 + $0x644] ss:$16 sps:$4 sm:$0xff]   ;;  %v2808_v19 = vld [vmem:[#allocation5 + $0x64c] ss:$16 sps:$4 sm:$0xff]  }
  0xc2   :  { %1544 = vmatprep.subr.bf16.mxu0 %v2713_v20  ;;  %1708 = vmatprep.subr.bf16.mxu1 %v2716_v21  ;;  %v2973_v20 = vmov 0   ;;  %v2806_v21 = vld [vmem:[#allocation5 + $0x648] ss:$16 sps:$4 sm:$0xff]  }
  0xc5   :  { %1545 = vmatpush1.bf16.msra.mxu0 %v2711_v22  ;;  %1709 = vmatpush1.bf16.msra.mxu1 %v2714_v23  ;;  %v2811_v22 = vld [vmem:[#allocation5 + $0x664] ss:$16 sps:$4 sm:$0xff]   ;;  %v2814_v23 = vld [vmem:[#allocation5 + $0x66c] ss:$16 sps:$4 sm:$0xff]  }
  0xc6   :  { %1546 = vmatprep.subr.bf16.mxu0 %v2719_v24  ;;  %1710 = vmatprep.subr.bf16.mxu1 %v2722_v25  ;;  %v2809_v24 = vld [vmem:[#allocation5 + $0x660] ss:$16 sps:$4 sm:$0xff]   ;;  %v2812_v25 = vld [vmem:[#allocation5 + $0x668] ss:$16 sps:$4 sm:$0xff]  }
  0xc9   :  { %1547 = vmatpush1.bf16.msra.mxu0 %v2717_v26  ;;  %1711 = vmatpush1.bf16.msra.mxu1 %v2720_v27  ;;  %v2817_v26 = vld [vmem:[#allocation5 + $0x684] ss:$16 sps:$4 sm:$0xff]   ;;  %v2820_v27 = vld [vmem:[#allocation5 + $0x68c] ss:$16 sps:$4 sm:$0xff]  }
  0xca   :  { %1548 = vmatprep.subr.bf16.mxu0 %v2725_v28  ;;  %1712 = vmatprep.subr.bf16.mxu1 %v2728_v29  ;;  %v2815_v28 = vld [vmem:[#allocation5 + $0x680] ss:$16 sps:$4 sm:$0xff]   ;;  %v2818_v29 = vld [vmem:[#allocation5 + $0x688] ss:$16 sps:$4 sm:$0xff]  }
  0xcd   :  { %1549 = vmatpush1.bf16.msra.mxu0 %v2723_v30  ;;  %1713 = vmatpush1.bf16.msra.mxu1 %v2726_v31  ;;  %v2823_v30 = vld [vmem:[#allocation5 + $0x6a4] ss:$16 sps:$4 sm:$0xff]   ;;  %v2826_v31 = vld [vmem:[#allocation5 + $0x6ac] ss:$16 sps:$4 sm:$0xff]  }
  0xce   :  { %1550 = vmatprep.subr.bf16.mxu0 %v2731_v32  ;;  %1714 = vmatprep.subr.bf16.mxu1 %v2734_v33  ;;  %v2821_v32 = vld [vmem:[#allocation5 + $0x6a0] ss:$16 sps:$4 sm:$0xff]   ;;  %v2824_v33 = vld [vmem:[#allocation5 + $0x6a8] ss:$16 sps:$4 sm:$0xff]  }
  0xd1   :  { %1551 = vmatpush1.bf16.msra.mxu0 %v2729_v34  ;;  %1715 = vmatpush1.bf16.msra.mxu1 %v2732_v35  ;;  %v2829_v34 = vld [vmem:[#allocation5 + $0x6c4] ss:$16 sps:$4 sm:$0xff]   ;;  %v2832_v35 = vld [vmem:[#allocation5 + $0x6cc] ss:$16 sps:$4 sm:$0xff]  }
  0xd2   :  { %1552 = vmatprep.subr.bf16.mxu0 %v2737_v36  ;;  %1716 = vmatprep.subr.bf16.mxu1 %v2740_v37  ;;  %v2827_v36 = vld [vmem:[#allocation5 + $0x6c0] ss:$16 sps:$4 sm:$0xff]   ;;  %v2830_v37 = vld [vmem:[#allocation5 + $0x6c8] ss:$16 sps:$4 sm:$0xff]  }
  0xd5   :  { %1553 = vmatpush1.bf16.msra.mxu0 %v2735_v38  ;;  %1717 = vmatpush1.bf16.msra.mxu1 %v2738_v39  ;;  %v2835_v38 = vld [vmem:[#allocation5 + $0x6e4] ss:$16 sps:$4 sm:$0xff]   ;;  %v2838_v39 = vld [vmem:[#allocation5 + $0x6ec] ss:$16 sps:$4 sm:$0xff]  }
  0xd6   :  { %1554 = vmatprep.subr.bf16.mxu0 %v2743_v40  ;;  %1718 = vmatprep.subr.bf16.mxu1 %v2746_v41  ;;  %v2833_v40 = vld [vmem:[#allocation5 + $0x6e0] ss:$16 sps:$4 sm:$0xff]   ;;  %v2836_v41 = vld [vmem:[#allocation5 + $0x6e8] ss:$16 sps:$4 sm:$0xff]  }
  0xd9   :  { %1555 = vmatpush1.bf16.msra.mxu0 %v2741_v42  ;;  %1719 = vmatpush1.bf16.msra.mxu1 %v2744_v43  ;;  %v2840_v42 = vld [vmem:[#allocation7 + $0x40] sm:$0xff]  }
  0xda   :  { %1556 = vmatprep.subr.bf16.mxu0 %v2749_v44  ;;  %1720 = vmatprep.subr.bf16.mxu1 %v2752_v45  ;;  %v2841_v43 = vld [vmem:[#allocation7 + $0xc0] sm:$0xff]   ;;  %v2839_v44 = vld [vmem:[#allocation2 + $0x18] ss:$0 sps:$4 sm:$0xff]  }
  0xdb   :  { %v2842_v45 = vld [vmem:[#allocation7] sm:$0xff]  }
  0xdd   :  { %1557 = vmatpush1.bf16.msra.mxu0 %v2747_v46  ;;  %1721 = vmatpush1.bf16.msra.mxu1 %v2750_v47  ;;  %v2843_v46 = vld [vmem:[#allocation7 + $0x80] sm:$0xff]   ;;  %v2844_v47 = vld [vmem:[#allocation7 + $0x48] sm:$0xff]  }
  0xde   :  { %1558 = vmatprep.subr.bf16.mxu0 %v2755_v48  ;;  %1722 = vmatprep.subr.bf16.mxu1 %v2758_v49  ;;  %v2845_v48 = vld [vmem:[#allocation7 + $0xc8] sm:$0xff]  }
  0xdf   :  { %v2846_v49 = vld [vmem:[#allocation7 + $0x8] sm:$0xff]  }
  0xe1   :  { %1559 = vmatpush1.bf16.msra.mxu0 %v2753_v50  ;;  %1723 = vmatpush1.bf16.msra.mxu1 %v2756_v51  ;;  %v2847_v50 = vld [vmem:[#allocation7 + $0x88] sm:$0xff]   ;;  %v2848_v51 = vld [vmem:[#allocation7 + $0x50] sm:$0xff]  }
  0xe2   :  { %1560 = vmatprep.subr.bf16.mxu0 %v2761_v52  ;;  %1724 = vmatprep.subr.bf16.mxu1 %v2764_v53  ;;  %v2849_v52 = vld [vmem:[#allocation7 + $0xd0] sm:$0xff]  }
  0xe3   :  { %v2850_v53 = vld [vmem:[#allocation7 + $0x10] sm:$0xff]  }
  0xe5   :  { %1561 = vmatpush1.bf16.msra.mxu0 %v2759_v54  ;;  %1725 = vmatpush1.bf16.msra.mxu1 %v2762_v55  ;;  %v2851_v54 = vld [vmem:[#allocation7 + $0x90] sm:$0xff]   ;;  %v2852_v55 = vld [vmem:[#allocation7 + $0x58] sm:$0xff]  }
  0xe6   :  { %1562 = vmatprep.subr.bf16.mxu0 %v2767_v56  ;;  %1726 = vmatprep.subr.bf16.mxu1 %v2770_v57  ;;  %v2853_v56 = vld [vmem:[#allocation7 + $0xd8] sm:$0xff]  }
  0xe7   :  { %v2854_v57 = vld [vmem:[#allocation7 + $0x18] sm:$0xff]  }
  0xe9   :  { %1563 = vmatpush1.bf16.msra.mxu0 %v2765_v58  ;;  %1727 = vmatpush1.bf16.msra.mxu1 %v2768_v59  ;;  %v2855_v58 = vld [vmem:[#allocation7 + $0x98] sm:$0xff]   ;;  %v2856_v59 = vld [vmem:[#allocation7 + $0x60] sm:$0xff]  }
  0xea   :  { %1564 = vmatprep.subr.bf16.mxu0 %v2773_v60  ;;  %1728 = vmatprep.subr.bf16.mxu1 %v2776_v61  ;;  %v2857_v60 = vld [vmem:[#allocation7 + $0xe0] sm:$0xff]  }
  0xeb   :  { %v2858_v61 = vld [vmem:[#allocation7 + $0x20] sm:$0xff]  }
  0xed   :  { %1565 = vmatpush1.bf16.msra.mxu0 %v2771_v62  ;;  %1729 = vmatpush1.bf16.msra.mxu1 %v2774_v63  ;;  %v2859_v62 = vld [vmem:[#allocation7 + $0xa0] sm:$0xff]   ;;  %v2860_v63 = vld [vmem:[#allocation7 + $0x68] sm:$0xff]  }
  0xee   :  { %1566 = vmatprep.subr.bf16.mxu0 %v2779_v0  ;;  %1730 = vmatprep.subr.bf16.mxu1 %v2782_v1  ;;  %v2861_v0 = vld [vmem:[#allocation7 + $0xe8] sm:$0xff]  }
  0xef   :  { %v2862_v1 = vld [vmem:[#allocation7 + $0x28] sm:$0xff]  }
  0xf1   :  { %1567 = vmatpush1.bf16.msra.mxu0 %v2777_v2  ;;  %1731 = vmatpush1.bf16.msra.mxu1 %v2780_v3  ;;  %v2863_v2 = vld [vmem:[#allocation7 + $0xa8] sm:$0xff]   ;;  %v2864_v3 = vld [vmem:[#allocation7 + $0x70] sm:$0xff]  }
  0xf2   :  { %1568 = vmatprep.subr.bf16.mxu0 %v2785_v4  ;;  %1732 = vmatprep.subr.bf16.mxu1 %v2788_v5  ;;  %v2865_v4 = vld [vmem:[#allocation7 + $0xf0] sm:$0xff]  }
  0xf3   :  { %v2866_v5 = vld [vmem:[#allocation7 + $0x30] sm:$0xff]  }
  0xf5   :  { %1569 = vmatpush1.bf16.msra.mxu0 %v2783_v6  ;;  %1733 = vmatpush1.bf16.msra.mxu1 %v2786_v7  ;;  %v2867_v6 = vld [vmem:[#allocation7 + $0xb0] sm:$0xff]   ;;  %v2868_v7 = vld [vmem:[#allocation7 + $0x78] sm:$0xff]  }
  0xf6   :  { %1579 = vmatprep.subr.bf16.mxu0 %v2793_v8  ;;  %1743 = vmatprep.subr.bf16.mxu1 %v2796_v9  ;;  %v2869_v8 = vld [vmem:[#allocation7 + $0xf8] sm:$0xff]  }
  0xf7   :  { %v2870_v9 = vld [vmem:[#allocation7 + $0x38] sm:$0xff]  }
  0xf8   :  { %1571 = vmatmul.mubr.bf16.vlgmr.msra.gmra.mrb[0].mxu0 %v2156_v10  ;;  %1735 = vmatmul.mubr.bf16.vlgmr.msra.gmra.mrb[0].mxu1 %v2156_v10  ;;  %v2871_v10 = vld [vmem:[#allocation7 + $0xb8] sm:$0xff]  }
  0xf9   :  { %1580 = vmatpush1.bf16.msra.mxu0 %v2791_v12  ;;  %1744 = vmatpush1.bf16.msra.mxu1 %v2794_v13  ;;  %v291_v12 = vlaneseq }
  0xfa   :  { %1581 = vmatprep.subr.bf16.mxu0 %v2799_v14  ;;  %1745 = vmatprep.subr.bf16.mxu1 %v2802_v15 }
  0xfb   :  { %1611 = vmatprep.mubr.bf16.mxu0 %v2973_v20  ;;  %1775 = vmatprep.mubr.bf16.mxu1 %v2973_v20  ;;  %v292_v13 = vshrl.u32 %v291_v12, 7 }
  0xfd   :  { %1582 = vmatpush1.bf16.msra.mxu0 %v2797_v16  ;;  %1746 = vmatpush1.bf16.msra.mxu1 %v2800_v17  ;;  %v293_v14 = vsub.s32 0, %v292_v13  ;;  %v301_v15 = vsub.s32 2, %v292_v13  ;;  %v289_v16 = vld [vmem:[%s3073_s2] sm:$0xf]  ;;  %v297_v17 = vsub.s32 1, %v292_v13 }
  0xfe   :  { %1583 = vmatprep.subr.bf16.mxu0 %v2805_v18  ;;  %1747 = vmatprep.subr.bf16.mxu1 %v2808_v19  ;;  %v305_v18 = vsub.s32 3, %v292_v13 }
  0xff   :  { %v294_v19 = vrot.slane %v289_v16, %v293_v14  ;;  %v302_v20 = vrot.slane %v289_v16, %v301_v15 }
 0x101   :  { %1584 = vmatpush1.bf16.msra.mxu0 %v2803_v11  ;;  %1748 = vmatpush1.bf16.msra.mxu1 %v2806_v21  ;;  %v298_v11 = vrot.slane %v289_v16, %v297_v17  ;;  %v306_v21 = vrot.slane %v289_v16, %v305_v18 }
 0x102   :  { %1585 = vmatprep.subr.bf16.mxu0 %v2811_v22  ;;  %1749 = vmatprep.subr.bf16.mxu1 %v2814_v23 }
 0x105   :  { %1586 = vmatpush1.bf16.msra.mxu0 %v2809_v24  ;;  %1750 = vmatpush1.bf16.msra.mxu1 %v2812_v25 }
 0x106   :  { %1587 = vmatprep.subr.bf16.mxu0 %v2817_v26  ;;  %1751 = vmatprep.subr.bf16.mxu1 %v2820_v27 }
 0x109   :  { %1588 = vmatpush1.bf16.msra.mxu0 %v2815_v28  ;;  %1752 = vmatpush1.bf16.msra.mxu1 %v2818_v29 }
 0x10a   :  { %1589 = vmatprep.subr.bf16.mxu0 %v2823_v30  ;;  %1753 = vmatprep.subr.bf16.mxu1 %v2826_v31 }
 0x10d   :  { %1590 = vmatpush1.bf16.msra.mxu0 %v2821_v32  ;;  %1754 = vmatpush1.bf16.msra.mxu1 %v2824_v33 }
 0x10e   :  { %1591 = vmatprep.subr.bf16.mxu0 %v2829_v34  ;;  %1755 = vmatprep.subr.bf16.mxu1 %v2832_v35 }
 0x111   :  { %1592 = vmatpush1.bf16.msra.mxu0 %v2827_v36  ;;  %1756 = vmatpush1.bf16.msra.mxu1 %v2830_v37 }
 0x112   :  { %1593 = vmatprep.subr.bf16.mxu0 %v2835_v38  ;;  %1757 = vmatprep.subr.bf16.mxu1 %v2838_v39 }
 0x115   :  { %1594 = vmatpush1.bf16.msra.mxu0 %v2833_v40  ;;  %1758 = vmatpush1.bf16.msra.mxu1 %v2836_v41 }
 0x116   :  { %2416 = vmatprep.subr.bf16.mxu0 %v2840_v42  ;;  %2438 = vmatprep.subr.bf16.mxu1 %v2841_v43 }
 0x118   :  { %1612 = vmatmul.mubr.bf16.vlgmr.msra.gmra.mrb[0].mxu0 %v2839_v44  ;;  %1776 = vmatmul.mubr.bf16.vlgmr.msra.gmra.mrb[0].mxu1 %v2839_v44  ;;  %v2383_v44 = vld [vmem:[%s3075_s4] ss:$0 sm:$0xff] }
 0x119   :  { %2417 = vmatpush3.bf16.msra.mxu0 %v2842_v45  ;;  %2439 = vmatpush3.bf16.msra.mxu1 %v2843_v46 }
 0x11a   :  { %2418 = vmatprep.subr.bf16.mxu0 %v2844_v47  ;;  %2440 = vmatprep.subr.bf16.mxu1 %v2845_v48 }
 0x11d   :  { %2419 = vmatpush3.bf16.msra.mxu0 %v2846_v49  ;;  %2441 = vmatpush3.bf16.msra.mxu1 %v2847_v50 }
 0x11e   :  { %2420 = vmatprep.subr.bf16.mxu0 %v2848_v51  ;;  %2442 = vmatprep.subr.bf16.mxu1 %v2849_v52 }
 0x121   :  { %2421 = vmatpush3.bf16.msra.mxu0 %v2850_v53  ;;  %2443 = vmatpush3.bf16.msra.mxu1 %v2851_v54 }
 0x122   :  { %2422 = vmatprep.subr.bf16.mxu0 %v2852_v55  ;;  %2444 = vmatprep.subr.bf16.mxu1 %v2853_v56 }
 0x125   :  { %2423 = vmatpush3.bf16.msra.mxu0 %v2854_v57  ;;  %2445 = vmatpush3.bf16.msra.mxu1 %v2855_v58 }
 0x126   :  { %2424 = vmatprep.subr.bf16.mxu0 %v2856_v59  ;;  %2446 = vmatprep.subr.bf16.mxu1 %v2857_v60 }
 0x129   :  { %2425 = vmatpush3.bf16.msra.mxu0 %v2858_v61  ;;  %2447 = vmatpush3.bf16.msra.mxu1 %v2859_v62 }
 0x12a   :  { %2426 = vmatprep.subr.bf16.mxu0 %v2860_v63  ;;  %2448 = vmatprep.subr.bf16.mxu1 %v2861_v0 }
 0x12d   :  { %2427 = vmatpush3.bf16.msra.mxu0 %v2862_v1  ;;  %2449 = vmatpush3.bf16.msra.mxu1 %v2863_v2 }
 0x12e   :  { %2428 = vmatprep.subr.bf16.mxu0 %v2864_v3  ;;  %2450 = vmatprep.subr.bf16.mxu1 %v2865_v4 }
 0x131   :  { %2429 = vmatpush3.bf16.msra.mxu0 %v2866_v5  ;;  %2451 = vmatpush3.bf16.msra.mxu1 %v2867_v6 }
 0x132   :  { %2430 = vmatprep.subr.bf16.mxu0 %v2868_v7  ;;  %2452 = vmatprep.subr.bf16.mxu1 %v2869_v8 }
 0x135   :  { %2431 = vmatpush3.bf16.msra.mxu0 %v2870_v9  ;;  %2453 = vmatpush3.bf16.msra.mxu1 %v2871_v10 }
 0x1eb   :  { %v1613_v22 = vpop.f32.mrb[0].mxu0  ;;  %v1777_v23 = vpop.f32.mrb[0].mxu1 }
 0x1ec   :  { %v2460_v24 = vadd.f32 %v1613_v22, %v294_v19  ;;  %v2462_v25 = vadd.f32 %v1777_v23, %v302_v20  ;;  %v1615_v26 = vpop.f32.mrb[1].mxu0  ;;  %v1779_v27 = vpop.f32.mrb[1].mxu1 }
 0x1ed   :  { %v2461_v28 = vadd.f32 %v1615_v26, %v298_v11  ;;  %v2463_v29 = vadd.f32 %v1779_v27, %v306_v21  ;;  %v1617_v30 = vpop.f32.mrb[2].mxu0  ;;  %v1781_v31 = vpop.f32.mrb[2].mxu1 }
 0x1ee   :  { %v1784_v32 = vmax.f32 %v2460_v24, 0.0  ;;  %v1786_v33 = vmax.f32 %v2462_v25, 0.0  ;;  %v1618_v34 = vpop.f32.mrb[3].mxu0  ;;  %v1782_v35 = vpop.f32.mrb[3].mxu1 }
 0x1ef   :  { %v1785_v36 = vmax.f32 %v2461_v28, 0.0  ;;  %v1787_v37 = vmax.f32 %v2463_v29, 0.0 }
 0x1f0   :  { %v1788_v40 = vpack.c.bf16 %v1784_v32, %v1784_v32  ;;  %v1790_v41 = vpack.c.bf16 %v1786_v33, %v1786_v33 }
 0x1f1   :  { %v1789_v38 = vpack.c.bf16 %v1785_v36, %v1785_v36  ;;  %v1791_v39 = vpack.c.bf16 %v1787_v37, %v1787_v37 }
 0x1f3   :  { %2087 = vmatprep.mubr.bf16.mxu0 %v1789_v38  ;;  %2127 = vmatprep.mubr.bf16.mxu1 %v1791_v39 }
 0x1f4   :  { %2088 = vmatmul.mubr.bf16.vlgmr.msra.gmra.mrb[4].mxu0 %v1788_v40  ;;  %2128 = vmatmul.mubr.bf16.vlgmr.msra.gmra.mrb[4].mxu1 %v1790_v41 }
 0x2c7   :  { %v2432_v42 = vpop.f32.mrb[4].mxu0  ;;  %v2454_v43 = vpop.f32.mrb[4].mxu1 }
 0x2c8   :  { %v2433_v45 = vpop.f32.mrb[5].mxu0  ;;  %v2455_v46 = vpop.f32.mrb[5].mxu1 }
 0x2c9   :  { %v2434_v47 = vadd.f32 %v2433_v45, %v2432_v42  ;;  %v2456_v48 = vadd.f32 %v2455_v46, %v2454_v43  ;;  %v2435_v49 = vpop.f32.mrb[6].mxu0  ;;  %v2457_v50 = vpop.f32.mrb[6].mxu1 }
 0x2ca   :  { %v2436_v51 = vpop.f32.mrb[7].mxu0  ;;  %v2458_v52 = vpop.f32.mrb[7].mxu1 }
 0x2cb   :  { %v2090_v53 = vadd.f32 %v2434_v47, %v2383_v44 }
 0x2cd   :  { %v2130_v54 = vadd.f32 %v2456_v48, %v2090_v53 }
 0x2cf   :  { %2135 = vst [vmem:[#allocation8] sm:$0xff] %v2130_v54 }
 0x2d0   :  { %2949 = shalt.err (!%p2946_p0)
}
 0x2d1   :  { %s2950_s12 = scalar_lea.hbm %s3076_s5, 128 }
 0x2d2   :  { %p2951_p1 = scmp.ne.s32.totalorder %s3076_s5, %s2950_s12  ;;  %p2954_p2 = scmp.lt.u32.totalorder %s2950_s12, %s3076_s5 }
 0x2d4   :  { %p2956_p3 = pnand %p2954_p2, %p2951_p1 }
 0x2d6   :  { %2959 = shalt.err (!%p2956_p3)
}
 0x2d7   :  { %2145 = dma.vmem_to_hbm [thread:$0]  %s2143_s9, 128, %s3076_s5, [#allocation4]  }
 0x2d8   :  { %2964 = dma.done.wait [#allocation4], 128  }
 0x2d9   :  { %2965 = vsyncadd [#allocation4], 4294967168 }
 0x2da   :  { %2149 = vsyncpa [#allocation3], 1 }
 0x2db   :  { %2150 = vsyncpa [#allocation6], 1 }
 0x2dc   :  { %2151 = vsyncpa [#allocation4], 1 }

</bundles_post_ra>
